<compile_context>
chip_gen: v7x
topology: tpu7x:2x2x1
jax: 0.10.0
libtpu: 0.0.40
codegen_flags: <defaults>
</compile_context>

<pallas_src>
import jax
import jax.numpy as jnp
from jax.experimental import pallas as pl
from jax.experimental.pallas import tpu as pltpu

_SUBLANES = 8
_LANES = 128


def _make_kernel(tm, n, m_valid, halo_rows):
    """Fused weighted backward divergence + primal prox update.

    tm        : rows per block (second-to-last block dim)
    n         : true image width (blocks span the full width)
    m_valid   : true image height
    halo_rows : rows in the overlapping halo window (8, or M if M < 8)
    """

    def kernel(coef_ref, x_ref, y_ref, img_ref, w_ref, yh_ref, wh_ref, o_ref):
        i = pl.program_id(0)

        a = coef_ref[0]          # 1        / (1 + lambda*tau)
        b = coef_ref[1]          # tau      / (1 + lambda*tau)
        c = coef_ref[2]          # lam*tau  / (1 + lambda*tau)

        x = x_ref[0].astype(jnp.float32)                              # (tm, n)
        img = img_ref[0].astype(jnp.float32)                          # (tm, n)
        y0w = y_ref[0].astype(jnp.float32) * w_ref[0].astype(jnp.float32)
        y1w = y_ref[1].astype(jnp.float32) * w_ref[1].astype(jnp.float32)

        col = jax.lax.broadcasted_iota(jnp.int32, (tm, n), 1)
        row = jax.lax.broadcasted_iota(jnp.int32, (tm, n), 0)
        zero = jnp.float32(0.0)

        # Horizontal backward divergence (block spans the full width N):
        #   d_h[:,0]   = y0w[:,0]
        #   d_h[:,j]   = y0w[:,j] - y0w[:,j-1]   for 1 <= j <= N-2
        #   d_h[:,N-1] = -y0w[:,N-2]
        zh = jnp.where(col == n - 1, zero, y0w)      # treat last column as 0
        sh = pltpu.roll(zh, shift=1, axis=1)         # sh[:, j] = zh[:, j-1]
        sh = jnp.where(col == 0, zero, sh)           # nothing left of column 0
        d_h = zh - sh

        # Vertical backward divergence.  The one-row halo (global row i*tm-1)
        # is re-read via the overlapping halo window instead of a carried
        # scratch, so row blocks are independent.
        last_local = (m_valid - 1) - i * tm          # outside [0,tm) for interior blocks
        zv = jnp.where(row == last_local, zero, y1w)  # treat last valid row as 0
        sv = pltpu.roll(zv, shift=1, axis=0)          # sv[m] = zv[m-1]
        prev = (yh_ref[0].astype(jnp.float32)[halo_rows - 1:halo_rows, :]
                * wh_ref[0].astype(jnp.float32)[halo_rows - 1:halo_rows, :])
        prev = jnp.where(i == 0, jnp.zeros_like(prev), prev)
        sv = jnp.where(row == 0, jnp.broadcast_to(prev, (tm, n)), sv)
        d_v = zv - sv

        out = a * x + b * (d_h + d_v) + c * img
        o_ref[0] = out.astype(o_ref.dtype)

    return kernel


def primal_weighted_update(x, y, img_obs, w, lambda_rof, tau, *, block_rows=None):
    """Fused PrimalWeightedUpdate.forward: x, img_obs [1,M,N]; y, w [2,M,N]."""
    assert x.ndim == 3 and x.shape[0] == 1, "x must be [1, M, N]"
    assert y.ndim == 3 and y.shape[0] == 2, "y must be [2, M, N]"
    assert img_obs.shape == x.shape, "img_obs must match x"
    assert w.shape == y.shape, "w must match y"
    _, M, N = x.shape
    dtype = x.dtype

    # Row-tile size: ~0.75 MiB per f32 (tm, n_lane_padded) slab.  7 slabs/step,
    # double-buffered ~= 10.5 MiB block VMEM -> safe under v5e's 16 MiB scoped
    # default (v6e/v7x have more headroom; correctness independent of tm).
    n_ceil = pl.cdiv(N, _LANES) * _LANES
    if block_rows is None:
        block_rows = max(_SUBLANES, (768 * 1024) // (n_ceil * 4))
    tm = max(_SUBLANES, (int(block_rows) // _SUBLANES) * _SUBLANES)
    if tm >= M:
        tm = M                                    # single full-height block
    grid_rows = pl.cdiv(M, tm)                    # last row block may be partial
    halo_rows = _SUBLANES if M >= _SUBLANES else M
    bpt = max(tm // halo_rows, 1)                 # halo blocks per row tile

    # Prox coefficients as runtime scalars (SMEM): no recompile per
    # (lambda_rof, tau) pair, traced values allowed, no in-kernel divide.
    lam = jnp.asarray(lambda_rof, jnp.float32)
    t = jnp.asarray(tau, jnp.float32)
    lt = lam * t
    inv_denom = 1.0 / (1.0 + lt)
    coefs = jnp.stack([inv_denom, t * inv_denom, lt * inv_denom])

    def row_map(i):
        return (0, i, 0)

    def halo_map(i):
        # Overlapping window [i*tm - halo_rows, i*tm) of channel 1; block 0
        # (masked out in-kernel) for the first row block.
        return (1, jnp.maximum(i * bpt - 1, 0), 0)

    kernel = _make_kernel(tm, N, M, halo_rows)

    out = pl.pallas_call(
        kernel,
        out_shape=jax.ShapeDtypeStruct((1, M, N), dtype),
        grid=(grid_rows,),
        in_specs=[
            pl.BlockSpec(memory_space=pltpu.MemorySpace.SMEM),   # coefs (3,)
            pl.BlockSpec((1, tm, N), row_map),                   # x
            pl.BlockSpec((2, tm, N), row_map),                   # y
            pl.BlockSpec((1, tm, N), row_map),                   # img_obs
            pl.BlockSpec((2, tm, N), row_map),                   # w
            pl.BlockSpec((1, halo_rows, N), halo_map),           # y[1] halo
            pl.BlockSpec((1, halo_rows, N), halo_map),           # w[1] halo
        ],
        out_specs=pl.BlockSpec((1, tm, N), row_map),
        compiler_params=pltpu.CompilerParams(
            # No cross-block dependency (halo is re-read, not carried):
            # row blocks shard across both v7x TensorCores.
            dimension_semantics=("parallel",),
        ),
    )(coefs, x, y, img_obs, w, y, w)
    return out


class PrimalWeightedUpdate:
    """Forward-pass equivalent of the PyTorch module."""

    def __init__(self, lambda_rof, tau):
        self.lambda_rof = lambda_rof
        self.tau = tau

    def __call__(self, x, y, img_obs, w):
        return primal_weighted_update(x, y, img_obs, w, self.lambda_rof, self.tau)


def _reference(x, y, img_obs, w, lambda_rof, tau):
    """Plain-JAX transcription of the PyTorch forward."""
    y_w = w * y
    d_h = jnp.zeros_like(x)
    d_h = d_h.at[0, :, 0].set(y_w[0, :, 0])
    d_h = d_h.at[0, :, 1:-1].set(y_w[0, :, 1:-1] - y_w[0, :, :-2])
    d_h = d_h.at[0, :, -1].set(-y_w[0, :, -2])
    d_v = jnp.zeros_like(x)
    d_v = d_v.at[0, 0, :].set(y_w[1, 0, :])
    d_v = d_v.at[0, 1:-1, :].set(y_w[1, 1:-1, :] - y_w[1, :-2, :])
    d_v = d_v.at[0, -1, :].set(-y_w[1, -2, :])
    div = d_h + d_v
    return (x + tau * div + lambda_rof * tau * img_obs) / (1.0 + lambda_rof * tau)


if __name__ == "__main__":
    key = jax.random.PRNGKey(0)
    kx, ky, kf, kw, k5, k6, k7, k8 = jax.random.split(key, 8)

    lambda_rof, tau = 7.0, 0.05

    # Case 1: small non-(8,128)-aligned image (single row block).
    M, N = 48, 72
    x = jax.random.normal(kx, (1, M, N), dtype=jnp.float32)
    y = jax.random.normal(ky, (2, M, N), dtype=jnp.float32)
    img_obs = jax.random.normal(kf, (1, M, N), dtype=jnp.float32)
    w = jax.random.uniform(kw, (2, M, N), dtype=jnp.float32)

    module = PrimalWeightedUpdate(lambda_rof, tau)
    out = jax.block_until_ready(module(x, y, img_obs, w))
    ref = _reference(x, y, img_obs, w, lambda_rof, tau)
    assert out.shape == (1, M, N)
    assert out.dtype == jnp.float32
    assert jnp.allclose(out, ref, atol=1e-5, rtol=1e-5)

    # Case 2: multi-block rows (exercises the overlapping halo window).
    out2 = jax.block_until_ready(
        primal_weighted_update(x, y, img_obs, w, lambda_rof, tau, block_rows=16)
    )
    assert jnp.allclose(out2, ref, atol=1e-5, rtol=1e-5)

    # Case 3: ragged row count (partial last row block) and width > 128.
    M3, N3 = 37, 150
    x3 = jax.random.normal(k5, (1, M3, N3), dtype=jnp.float32)
    y3 = jax.random.normal(k6, (2, M3, N3), dtype=jnp.float32)
    f3 = jax.random.normal(k7, (1, M3, N3), dtype=jnp.float32)
    w3 = jax.random.uniform(k8, (2, M3, N3), dtype=jnp.float32)
    out3 = jax.block_until_ready(
        primal_weighted_update(x3, y3, f3, w3, lambda_rof, tau, block_rows=8)
    )
    ref3 = _reference(x3, y3, f3, w3, lambda_rof, tau)
    assert jnp.allclose(out3, ref3, atol=1e-5, rtol=1e-5)

    print("KERNEL_OK")
</pallas_src>

<mosaic_0001>
module attributes {stable_mosaic.version = 11 : i64} {
  func.func @kernel(%arg0: i32, %arg1: memref<3xf32, #tpu.memory_space<smem>>, %arg2: memref<1x48x72xf32, #tpu.memory_space<vmem>>, %arg3: memref<2x48x72xf32, #tpu.memory_space<vmem>>, %arg4: memref<1x48x72xf32, #tpu.memory_space<vmem>>, %arg5: memref<2x48x72xf32, #tpu.memory_space<vmem>>, %arg6: memref<1x8x72xf32, #tpu.memory_space<vmem>>, %arg7: memref<1x8x72xf32, #tpu.memory_space<vmem>>, %arg8: memref<1x48x72xf32, #tpu.memory_space<vmem>>) attributes {dimension_semantics = [#tpu.dimension_semantics<parallel>], iteration_bounds = array<i64: 1>, scalar_prefetch = 0 : i64, scratch_operands = 0 : i64, tpu.core_type = #tpu.core_type<tc>, window_params = [{transform_indices = @transform_0, window_bounds = array<i64: 3>}, {transform_indices = @transform_1, window_bounds = array<i64: 1, 48, 72>}, {transform_indices = @transform_2, window_bounds = array<i64: 2, 48, 72>}, {transform_indices = @transform_3, window_bounds = array<i64: 1, 48, 72>}, {transform_indices = @transform_4, window_bounds = array<i64: 2, 48, 72>}, {transform_indices = @transform_5, window_bounds = array<i64: 1, 8, 72>}, {transform_indices = @transform_6, window_bounds = array<i64: 1, 8, 72>}, {transform_indices = @transform_7, window_bounds = array<i64: 1, 48, 72>}]} {
    %c0 = arith.constant 0 : index
    %0 = memref.load %arg1[%c0] : memref<3xf32, #tpu.memory_space<smem>>
    %c1 = arith.constant 1 : index
    %1 = memref.load %arg1[%c1] : memref<3xf32, #tpu.memory_space<smem>>
    %c2 = arith.constant 2 : index
    %2 = memref.load %arg1[%c2] : memref<3xf32, #tpu.memory_space<smem>>
    %c0_0 = arith.constant 0 : index
    %c0_1 = arith.constant 0 : index
    %c0_2 = arith.constant 0 : index
    %3 = vector.load %arg2[%c0_0, %c0_1, %c0_2] : memref<1x48x72xf32, #tpu.memory_space<vmem>>, vector<1x48x72xf32>
    %4 = vector.shape_cast %3 : vector<1x48x72xf32> to vector<48x72xf32>
    %c0_3 = arith.constant 0 : index
    %c0_4 = arith.constant 0 : index
    %c0_5 = arith.constant 0 : index
    %5 = vector.load %arg4[%c0_3, %c0_4, %c0_5] : memref<1x48x72xf32, #tpu.memory_space<vmem>>, vector<1x48x72xf32>
    %6 = vector.shape_cast %5 : vector<1x48x72xf32> to vector<48x72xf32>
    %c0_6 = arith.constant 0 : index
    %c0_7 = arith.constant 0 : index
    %c0_8 = arith.constant 0 : index
    %7 = vector.load %arg3[%c0_6, %c0_7, %c0_8] : memref<2x48x72xf32, #tpu.memory_space<vmem>>, vector<1x48x72xf32>
    %8 = vector.shape_cast %7 : vector<1x48x72xf32> to vector<48x72xf32>
    %c0_9 = arith.constant 0 : index
    %c0_10 = arith.constant 0 : index
    %c0_11 = arith.constant 0 : index
    %9 = vector.load %arg5[%c0_9, %c0_10, %c0_11] : memref<2x48x72xf32, #tpu.memory_space<vmem>>, vector<1x48x72xf32>
    %10 = vector.shape_cast %9 : vector<1x48x72xf32> to vector<48x72xf32>
    %11 = arith.mulf %8, %10 : vector<48x72xf32>
    %c1_12 = arith.constant 1 : index
    %c0_13 = arith.constant 0 : index
    %c0_14 = arith.constant 0 : index
    %12 = vector.load %arg3[%c1_12, %c0_13, %c0_14] : memref<2x48x72xf32, #tpu.memory_space<vmem>>, vector<1x48x72xf32>
    %13 = vector.shape_cast %12 : vector<1x48x72xf32> to vector<48x72xf32>
    %c1_15 = arith.constant 1 : index
    %c0_16 = arith.constant 0 : index
    %c0_17 = arith.constant 0 : index
    %14 = vector.load %arg5[%c1_15, %c0_16, %c0_17] : memref<2x48x72xf32, #tpu.memory_space<vmem>>, vector<1x48x72xf32>
    %15 = vector.shape_cast %14 : vector<1x48x72xf32> to vector<48x72xf32>
    %16 = arith.mulf %13, %15 : vector<48x72xf32>
    %17 = tpu.iota {dimensions = array<i32: 1>} : vector<48x72xi32>
    %18 = tpu.iota {dimensions = array<i32: 0>} : vector<48x72xi32>
    %c71_i32 = arith.constant 71 : i32
    %19 = vector.broadcast %c71_i32 : i32 to vector<48x72xi32>
    %20 = arith.cmpi eq, %17, %19 : vector<48x72xi32>
    %cst = arith.constant 0.000000e+00 : f32
    %21 = vector.broadcast %cst : f32 to vector<48x72xf32>
    %22 = arith.select %20, %21, %11 : vector<48x72xi1>, vector<48x72xf32>
    %c1_i32 = arith.constant 1 : i32
    %23 = tpu.dynamic_rotate %22 by %c1_i32 dim 1 : vector<48x72xf32>, i32 -> vector<48x72xf32>
    %c0_i32 = arith.constant 0 : i32
    %24 = vector.broadcast %c0_i32 : i32 to vector<48x72xi32>
    %25 = arith.cmpi eq, %17, %24 : vector<48x72xi32>
    %cst_18 = arith.constant 0.000000e+00 : f32
    %26 = vector.broadcast %cst_18 : f32 to vector<48x72xf32>
    %27 = arith.select %25, %26, %23 : vector<48x72xi1>, vector<48x72xf32>
    %28 = arith.subf %22, %27 : vector<48x72xf32>
    %c48_i32 = arith.constant 48 : i32
    %29 = arith.muli %arg0, %c48_i32 : i32
    %c47_i32 = arith.constant 47 : i32
    %30 = arith.subi %c47_i32, %29 : i32
    %31 = vector.broadcast %30 : i32 to vector<48x72xi32>
    %32 = arith.cmpi eq, %18, %31 : vector<48x72xi32>
    %cst_19 = arith.constant 0.000000e+00 : f32
    %33 = vector.broadcast %cst_19 : f32 to vector<48x72xf32>
    %34 = arith.select %32, %33, %16 : vector<48x72xi1>, vector<48x72xf32>
    %c1_i32_20 = arith.constant 1 : i32
    %35 = tpu.dynamic_rotate %34 by %c1_i32_20 dim 0 : vector<48x72xf32>, i32 -> vector<48x72xf32>
    %c0_21 = arith.constant 0 : index
    %c0_22 = arith.constant 0 : index
    %c0_23 = arith.constant 0 : index
    %36 = vector.load %arg6[%c0_21, %c0_22, %c0_23] : memref<1x8x72xf32, #tpu.memory_space<vmem>>, vector<1x8x72xf32>
    %37 = vector.shape_cast %36 : vector<1x8x72xf32> to vector<8x72xf32>
    %38 = vector.extract_strided_slice %37 {offsets = [7, 0], sizes = [1, 72], strides = [1, 1]} : vector<8x72xf32> to vector<1x72xf32>
    %c0_24 = arith.constant 0 : index
    %c0_25 = arith.constant 0 : index
    %c0_26 = arith.constant 0 : index
    %39 = vector.load %arg7[%c0_24, %c0_25, %c0_26] : memref<1x8x72xf32, #tpu.memory_space<vmem>>, vector<1x8x72xf32>
    %40 = vector.shape_cast %39 : vector<1x8x72xf32> to vector<8x72xf32>
    %41 = vector.extract_strided_slice %40 {offsets = [7, 0], sizes = [1, 72], strides = [1, 1]} : vector<8x72xf32> to vector<1x72xf32>
    %42 = arith.mulf %38, %41 : vector<1x72xf32>
    %c0_i32_27 = arith.constant 0 : i32
    %43 = arith.cmpi eq, %arg0, %c0_i32_27 : i32
    %cst_28 = arith.constant 0.000000e+00 : f32
    %44 = vector.broadcast %cst_28 : f32 to vector<1x72xf32>
    %45 = arith.select %43, %44, %42 : vector<1x72xf32>
    %c0_i32_29 = arith.constant 0 : i32
    %46 = vector.broadcast %c0_i32_29 : i32 to vector<48x72xi32>
    %47 = arith.cmpi eq, %18, %46 : vector<48x72xi32>
    %48 = vector.shape_cast %45 : vector<1x72xf32> to vector<1x72xf32>
    %49 = vector.broadcast %48 : vector<1x72xf32> to vector<48x72xf32>
    %50 = arith.select %47, %49, %35 : vector<48x72xi1>, vector<48x72xf32>
    %51 = arith.subf %34, %50 : vector<48x72xf32>
    %52 = vector.broadcast %0 : f32 to vector<48x72xf32>
    %53 = arith.mulf %52, %4 : vector<48x72xf32>
    %54 = arith.addf %28, %51 : vector<48x72xf32>
    %55 = vector.broadcast %1 : f32 to vector<48x72xf32>
    %56 = arith.mulf %55, %54 : vector<48x72xf32>
    %57 = arith.addf %53, %56 : vector<48x72xf32>
    %58 = vector.broadcast %2 : f32 to vector<48x72xf32>
    %59 = arith.mulf %58, %6 : vector<48x72xf32>
    %60 = arith.addf %57, %59 : vector<48x72xf32>
    %c0_30 = arith.constant 0 : index
    %c0_31 = arith.constant 0 : index
    %c0_32 = arith.constant 0 : index
    %61 = vector.load %arg8[%c0_30, %c0_31, %c0_32] : memref<1x48x72xf32, #tpu.memory_space<vmem>>, vector<1x48x72xf32>
    %62 = vector.shape_cast %61 : vector<1x48x72xf32> to vector<48x72xf32>
    %63 = vector.shape_cast %60 : vector<48x72xf32> to vector<1x48x72xf32>
    tpu.vector_store %arg8[%c0_30, %c0_31, %c0_32], %63 {strides = array<i32>} : memref<1x48x72xf32, #tpu.memory_space<vmem>>, vector<1x48x72xf32>,
    return
  }
  func.func @transform_0(%arg0: i32) -> i32 {
    %c0_i32 = arith.constant 0 : i32
    %c0_i32_0 = arith.constant 0 : i32
    return %c0_i32 : i32
  }
  func.func @transform_1(%arg0: i32) -> (i32, i32, i32) {
    %c0_i32 = arith.constant 0 : i32
    %c0_i32_0 = arith.constant 0 : i32
    %c0_i32_1 = arith.constant 0 : i32
    return %c0_i32, %arg0, %c0_i32_0 : i32, i32, i32
  }
  func.func @transform_2(%arg0: i32) -> (i32, i32, i32) {
    %c0_i32 = arith.constant 0 : i32
    %c0_i32_0 = arith.constant 0 : i32
    %c0_i32_1 = arith.constant 0 : i32
    return %c0_i32, %arg0, %c0_i32_0 : i32, i32, i32
  }
  func.func @transform_3(%arg0: i32) -> (i32, i32, i32) {
    %c0_i32 = arith.constant 0 : i32
    %c0_i32_0 = arith.constant 0 : i32
    %c0_i32_1 = arith.constant 0 : i32
    return %c0_i32, %arg0, %c0_i32_0 : i32, i32, i32
  }
  func.func @transform_4(%arg0: i32) -> (i32, i32, i32) {
    %c0_i32 = arith.constant 0 : i32
    %c0_i32_0 = arith.constant 0 : i32
    %c0_i32_1 = arith.constant 0 : i32
    return %c0_i32, %arg0, %c0_i32_0 : i32, i32, i32
  }
  func.func @transform_5(%arg0: i32) -> (i32, i32, i32) {
    %c6_i32 = arith.constant 6 : i32
    %0 = arith.muli %arg0, %c6_i32 : i32
    %c1_i32 = arith.constant 1 : i32
    %1 = arith.subi %0, %c1_i32 : i32
    %c0_i32 = arith.constant 0 : i32
    %2 = arith.maxsi %1, %c0_i32 : i32
    %c1_i32_0 = arith.constant 1 : i32
    %c0_i32_1 = arith.constant 0 : i32
    %c0_i32_2 = arith.constant 0 : i32
    return %c1_i32_0, %2, %c0_i32_1 : i32, i32, i32
  }
  func.func @transform_6(%arg0: i32) -> (i32, i32, i32) {
    %c6_i32 = arith.constant 6 : i32
    %0 = arith.muli %arg0, %c6_i32 : i32
    %c1_i32 = arith.constant 1 : i32
    %1 = arith.subi %0, %c1_i32 : i32
    %c0_i32 = arith.constant 0 : i32
    %2 = arith.maxsi %1, %c0_i32 : i32
    %c1_i32_0 = arith.constant 1 : i32
    %c0_i32_1 = arith.constant 0 : i32
    %c0_i32_2 = arith.constant 0 : i32
    return %c1_i32_0, %2, %c0_i32_1 : i32, i32, i32
  }
  func.func @transform_7(%arg0: i32) -> (i32, i32, i32) {
    %c0_i32 = arith.constant 0 : i32
    %c0_i32_0 = arith.constant 0 : i32
    %c0_i32_1 = arith.constant 0 : i32
    return %c0_i32, %arg0, %c0_i32_0 : i32, i32, i32
  }
}

</mosaic_0001>

<bundles_post_ra>
// kernel: tpu_custom_call.1
= control target key start
LH: loop header
LB: loop body
LE: loop exit
PB: predicated region body
PF: predicated region fallthrough
CT: control target
= control target key end

     0   :  { %12 = vsyncpa [#allocation5], 0  ;;  %s969_s0 = inlined_call_operand.hbm [shape: f32[3], index: 0, kind: input, shape index: {}]   ;;  %s970_s1 = inlined_call_operand.hbm [shape: f32[1,48,72], index: 1, kind: input, shape index: {}]   ;;  %s971_s2 = inlined_call_operand.hbm [shape: f32[2,48,72], index: 2, kind: input, shape index: {}]   ;;  %s972_s3 = inlined_call_operand.hbm [shape: f32[1,48,72], index: 3, kind: input, shape index: {}]   ;;  %s973_s4 = inlined_call_operand.hbm [shape: f32[2,48,72], index: 4, kind: input, shape index: {}]   ;;  %s974_s5 = inlined_call_operand.hbm [shape: f32[2,48,72], index: 5, kind: input, shape index: {}]   ;;  %s975_s6 = inlined_call_operand.hbm [shape: f32[2,48,72], index: 6, kind: input, shape index: {}]   ;;  %s976_s7 = inlined_call_operand.hbm [shape: f32[1,48,72], index: 7, kind: output, shape index: {}]  }
   0x1   :  { %13 = vsyncpa [#allocation3], 0 }
   0x2   :  { %14 = vsyncpa [#allocation8], 0 }
   0x3   :  { %15 = vsyncpa [#allocation11], 0 }
   0x4   :  { %16 = vsyncpa [#allocation14], 0 }
   0x5   :  { %17 = vsyncpa [#allocation4], 0  ;;  %s634_s24 = smov [#allocation7]   ;;  %s635_s26 = smov [#allocation10]  }
   0x6   :  { %s43_s25 = sshll.u32 %s634_s24, 4  ;;  %s67_s27 = sshll.u32 %s635_s26, 4  ;;  %s44_s25 = int_to_ptr.vmem [resolvable:$true] %s43_s25  ;;  %s687_s27 = int_to_ptr.vmem [resolvable:$true] %s67_s27 }
   0x7   :  { %s452_s30 = scalar_lea.hbm %s971_s2, 1536 }
   0x8   :  { %p453_p0 = scmp.ne.s32.totalorder %s971_s2, %s452_s30  ;;  %p456_p1 = scmp.lt.u32.totalorder %s452_s30, %s971_s2 }
   0xa   :  { %p458_p2 = pnand %p456_p1, %p453_p0 }
   0xc   :  { %461 = shalt.err (!%p458_p2)
}
   0xd   :  { %s462_s12 = scalar_lea.vmem %s44_s25, 1536  ;;  %p467_p4 = scmp.lt.s32.totalorder %s44_s25, %s44_s25 }
   0xe   :  { %p463_p3 = scmp.ne.s32.totalorder %s44_s25, %s462_s12  ;;  %p468_p5 = scmp.lt.s32.totalorder %s462_s12, %s462_s12 }
  0x10   :  { %p469_p6 = por %p468_p5, %p467_p4 }
  0x12   :  { %p470_p7 = pnand %p469_p6, %p463_p3 }
  0x14   :  { %473 = shalt.err (!%p470_p7)
}
  0x15   :  { %s636_s13 = smov 128   ;;  %s637_s14 = smov 8  }
  0x16   :  { %49 = dma.hbm_to_vmem [thread:$0]  %s971_s2, 1536, %s44_s25, [#allocation8], %s636_s13, %s636_s13, %s637_s14  }
  0x17   :  { %s474_s19 = scalar_lea.hbm %s973_s4, 1536 }
  0x18   :  { %p475_p8 = scmp.ne.s32.totalorder %s973_s4, %s474_s19  ;;  %p478_p9 = scmp.lt.u32.totalorder %s474_s19, %s973_s4 }
  0x1a   :  { %p480_p10 = pnand %p478_p9, %p475_p8 }
  0x1c   :  { %483 = shalt.err (!%p480_p10)
}
  0x1d   :  { %s484_s24 = scalar_lea.vmem %s687_s27, 1536  ;;  %p489_p12 = scmp.lt.s32.totalorder %s687_s27, %s687_s27 }
  0x1e   :  { %p485_p11 = scmp.ne.s32.totalorder %s687_s27, %s484_s24  ;;  %p490_p13 = scmp.lt.s32.totalorder %s484_s24, %s484_s24 }
  0x20   :  { %p491_p0 = por %p490_p13, %p489_p12 }
  0x22   :  { %p492_p1 = pnand %p491_p0, %p485_p11 }
  0x24   :  { %495 = shalt.err (!%p492_p1)
}
  0x25   :  { %73 = dma.hbm_to_vmem [thread:$0]  %s973_s4, 1536, %s687_s27, [#allocation11], %s636_s13, %s636_s13, %s637_s14  }
  0x26   :  { %s496_s29 = scalar_lea.hbm %s969_s0, 16 }
  0x27   :  { %p497_p2 = scmp.ne.s32.totalorder %s969_s0, %s496_s29  ;;  %p500_p3 = scmp.lt.u32.totalorder %s496_s29, %s969_s0 }
  0x29   :  { %p502_p4 = pnand %p500_p3, %p497_p2 }
  0x2b   :  { %505 = shalt.err (!%p502_p4)
}
  0x2c   :  { %s638_s11 = smov [#allocation2]   ;;  %s639_s4 = smov [#allocation6]  }
  0x2d   :  { %25 = dma.hbm_to_smem %s969_s0, 16, %s638_s11, [#allocation5]  }
  0x2e   :  { %s31_s27 = sshll.u32 %s639_s4, 4  ;;  %s640_s16 = smov [#allocation9]   ;;  %s32_s27 = int_to_ptr.vmem [resolvable:$true] %s31_s27 }
  0x2f   :  { %s55_s17 = sshll.u32 %s640_s16, 4  ;;  %s506_s20 = scalar_lea.hbm %s970_s1, 768  ;;  %s56_s17 = int_to_ptr.vmem [resolvable:$true] %s55_s17 }
  0x30   :  { %p507_p5 = scmp.ne.s32.totalorder %s970_s1, %s506_s20  ;;  %p510_p6 = scmp.lt.u32.totalorder %s506_s20, %s970_s1 }
  0x32   :  { %p512_p7 = pnand %p510_p6, %p507_p5 }
  0x34   :  { %515 = shalt.err (!%p512_p7)
}
  0x35   :  { %s516_s0 = scalar_lea.vmem %s32_s27, 768  ;;  %p521_p9 = scmp.lt.s32.totalorder %s32_s27, %s32_s27 }
  0x36   :  { %p517_p8 = scmp.ne.s32.totalorder %s32_s27, %s516_s0  ;;  %p522_p10 = scmp.lt.s32.totalorder %s516_s0, %s516_s0 }
  0x38   :  { %p523_p11 = por %p522_p10, %p521_p9 }
  0x3a   :  { %p524_p12 = pnand %p523_p11, %p517_p8 }
  0x3c   :  { %527 = shalt.err (!%p524_p12)
}
  0x3d   :  { %37 = dma.hbm_to_vmem [thread:$0]  %s970_s1, 768, %s32_s27, [#allocation3], %s636_s13, %s636_s13, %s637_s14  }
  0x3e   :  { %s754_s29 = scalar_lea.hbm %s974_s5, 768  ;;  %s528_s9 = scalar_lea.hbm %s972_s3, 768 }
  0x3f   :  { %p529_p13 = scmp.ne.s32.totalorder %s972_s3, %s528_s9  ;;  %p532_p0 = scmp.lt.u32.totalorder %s528_s9, %s972_s3 }
  0x41   :  { %p534_p1 = pnand %p532_p0, %p529_p13 }
  0x43   :  { %537 = shalt.err (!%p534_p1)
}
  0x44   :  { %s538_s1 = scalar_lea.vmem %s56_s17, 768  ;;  %p543_p3 = scmp.lt.s32.totalorder %s56_s17, %s56_s17 }
  0x45   :  { %p539_p2 = scmp.ne.s32.totalorder %s56_s17, %s538_s1  ;;  %p544_p4 = scmp.lt.s32.totalorder %s538_s1, %s538_s1 }
  0x47   :  { %p545_p5 = por %p544_p4, %p543_p3 }
  0x49   :  { %p546_p6 = pnand %p545_p5, %p539_p2 }
  0x4b   :  { %549 = shalt.err (!%p546_p6)
}
  0x4c   :  { %61 = dma.hbm_to_vmem [thread:$0]  %s972_s3, 768, %s56_s17, [#allocation8], %s636_s13, %s636_s13, %s637_s14  }
  0x4d   :  { %s774_s19 = scalar_lea.hbm %s975_s6, 768  ;;  %s641_s20 = smov [#allocation12]  }
  0x4e   :  { %s87_s21 = sshll.u32 %s641_s20, 4  ;;  %s642_s22 = smov [#allocation13]   ;;  %s88_s21 = int_to_ptr.vmem [resolvable:$true] %s87_s21 }
  0x4f   :  { %s104_s23 = sshll.u32 %s642_s22, 4  ;;  %s574_s2 = scalar_lea.hbm %s974_s5, 896  ;;  %s105_s23 = int_to_ptr.vmem [resolvable:$true] %s104_s23 }
  0x50   :  { %p551_p7 = scmp.ne.s32.totalorder %s754_s29, %s574_s2  ;;  %s552_s28 = scalar_lea.hbm %s974_s5, 1536 }
  0x51   :  { %p553_p8 = scmp.lt.u32.totalorder %s754_s29, %s974_s5  ;;  %p554_p9 = scmp.lt.u32.totalorder %s552_s28, %s574_s2 }
  0x52   :  { %p556_p11 = scmp.lt.u32.totalorder %s574_s2, %s754_s29 }
  0x53   :  { %p555_p10 = por %p554_p9, %p553_p8 }
  0x55   :  { %p557_p12 = por %p556_p11, %p555_p10 }
  0x57   :  { %p558_p13 = pnand %p557_p12, %p551_p7 }
  0x59   :  { %561 = shalt.err (!%p558_p13)
}
  0x5a   :  { %s562_s30 = scalar_lea.vmem %s88_s21, 128  ;;  %p567_p1 = scmp.lt.s32.totalorder %s88_s21, %s88_s21 }
  0x5b   :  { %p563_p0 = scmp.ne.s32.totalorder %s88_s21, %s562_s30  ;;  %p568_p2 = scmp.lt.s32.totalorder %s562_s30, %s562_s30 }
  0x5d   :  { %p569_p3 = por %p568_p2, %p567_p1 }
  0x5f   :  { %p570_p4 = pnand %p569_p3, %p563_p0 }
  0x61   :  { %573 = shalt.err (!%p570_p4)
}
  0x62   :  { %90 = dma.hbm_to_vmem [thread:$0]  %s754_s29, 128, %s88_s21, [#allocation11]  }
  0x63   :  { %s599_s9 = scalar_lea.hbm %s975_s6, 896  ;;  %s577_s12 = scalar_lea.hbm %s975_s6, 1536 }
  0x64   :  { %p576_p5 = scmp.ne.s32.totalorder %s774_s19, %s599_s9  ;;  %p578_p6 = scmp.lt.u32.totalorder %s774_s19, %s975_s6 }
  0x65   :  { %p579_p7 = scmp.lt.u32.totalorder %s577_s12, %s599_s9  ;;  %p581_p9 = scmp.lt.u32.totalorder %s599_s9, %s774_s19 }
  0x67   :  { %p580_p8 = por %p579_p7, %p578_p6 }
  0x69   :  { %p582_p10 = por %p581_p9, %p580_p8 }
  0x6b   :  { %p583_p11 = pnand %p582_p10, %p576_p5 }
  0x6d   :  { %586 = shalt.err (!%p583_p11)
}
  0x6e   :  { %s587_s29 = scalar_lea.vmem %s105_s23, 128  ;;  %p592_p13 = scmp.lt.s32.totalorder %s105_s23, %s105_s23 }
  0x6f   :  { %p588_p12 = scmp.ne.s32.totalorder %s105_s23, %s587_s29  ;;  %p593_p0 = scmp.lt.s32.totalorder %s587_s29, %s587_s29 }
  0x71   :  { %p594_p1 = por %p593_p0, %p592_p13 }
  0x73   :  { %p595_p2 = pnand %p594_p1, %p588_p12 }
  0x75   :  { %598 = shalt.err (!%p595_p2)
}
  0x76   :  { %107 = dma.hbm_to_vmem [thread:$0]  %s774_s19, 128, %s105_s23, [#allocation14]  }
  0x77   :  { %622 = dma.done.wait [#allocation5], 16  }
  0x78   :  { %623 = vsyncadd [#allocation5], 4294967280 }
  0x79   :  { %624 = dma.done.wait [#allocation3], 768  }
  0x7a   :  { %625 = vsyncadd [#allocation3], 4294966528 }
  0x7b   :  { %626 = dma.done.wait [#allocation8], 2304  }
  0x7c   :  { %627 = vsyncadd [#allocation8], 4294964992 }
  0x7d   :  { %628 = dma.done.wait [#allocation11], 1664  }
  0x7e   :  { %629 = vsyncadd [#allocation11], 4294965632 }
  0x7f   :  { %630 = dma.done.wait [#allocation14], 128  }
  0x80   :  { %631 = vsyncadd [#allocation14], 4294967168 }
  0x81   :  { %129 = sfence }
  0x82   :  { %v153_v0 = vld [vmem:[#allocation7] sm:$0xff]  ;;  %v159_v1 = vld [vmem:[#allocation10] sm:$0xff]  ;;  %v191_v2 = vlaneseq  ;;  %v154_v3 = vld [vmem:[#allocation7 + $0x8] sm:$0xff]  ;;  %s643_s6 = smov 72   ;;  %vm207_vm1 = vcmask 1048128   ;;  %s644_s4 = smov 57  }
  0x83   :  { %v165_v4 = vmul.f32 %v159_v1, %v153_v0  ;;  %v160_v5 = vld [vmem:[#allocation10 + $0x8] sm:$0xff]  ;;  %v155_v6 = vld [vmem:[#allocation7 + $0x10] sm:$0xff]  ;;  %v161_v7 = vld [vmem:[#allocation10 + $0x10] sm:$0xff]  ;;  %s138_s27 = sld [smem:[#allocation2]]  ;;  %v645_v0 = vmov 0.0   ;;  %s437_s16 = sld [smem:[#allocation2 + $0x1]] }
  0x84   :  { %v803_v8 = vand.u32 127, %v191_v2  ;;  %v167_v9 = vmul.f32 %v161_v7, %v155_v6  ;;  %v156_v10 = vld [vmem:[#allocation7 + $0x18] sm:$0xff]  ;;  %v162_v11 = vld [vmem:[#allocation10 + $0x18] sm:$0xff]  ;;  %v166_v12 = vmul.f32 %v160_v5, %v154_v3  ;;  %v157_v14 = vld [vmem:[#allocation7 + $0x20] sm:$0xff]  ;;  %v873_v50 = vshrl.u32 %v191_v2, 7  ;;  %s438_s18 = sld [smem:[#allocation2 + $0x2]] }
  0x85   :  { %v168_v13 = vmul.f32 %v162_v11, %v156_v10  ;;  %v163_v15 = vld [vmem:[#allocation10 + $0x20] sm:$0xff]  ;;  %v158_v16 = vld [vmem:[#allocation7 + $0x28] sm:$0xff]  ;;  %v164_v17 = vld [vmem:[#allocation10 + $0x28] sm:$0xff]  ;;  %vm281_vm5 = vcmask 465920   ;;  %vm403_vm7 = vcmask 588800   ;;  %s646_s19 = smov [#allocation15]  }
  0x86   :  { %vm200_vm0 = vcmp.eq.s32.totalorder %v803_v8, 71  ;;  %v169_v22 = vmul.f32 %v163_v15, %v157_v14  ;;  %v170_v23 = vmul.f32 %v164_v17, %v158_v16  ;;  %v177_v51 = vld [vmem:[#allocation7 + $0x58] sm:$0xff]  ;;  %v184_v52 = vld [vmem:[#allocation10 + $0x58] sm:$0xff]  ;;  %v199_v53 = vadd.s32 40, %v873_v50  ;;  %v172_v54 = vld [vmem:[#allocation7 + $0x30] sm:$0xff]  ;;  %s415_s20 = sshll.u32 %s646_s19, 4  ;;  %s416_s20 = int_to_ptr.vmem [resolvable:$true] %s415_s20 }
  0x87   :  { %v808_v18 = vsel %vm200_vm0, 0.0, %v165_v4  ;;  %v812_v19 = vsel %vm200_vm0, 0.0, %v167_v9  ;;  %v820_v20 = vsel %vm200_vm0, 0.0, %v166_v12  ;;  %v824_v21 = vsel %vm200_vm0, 0.0, %v168_v13  ;;  %v179_v55 = vld [vmem:[#allocation10 + $0x30] sm:$0xff]  ;;  %v173_v62 = vld [vmem:[#allocation7 + $0x38] sm:$0xff]  ;;  %p605_p4 = scmp.lt.s32.totalorder %s416_s20, %s416_s20 }
  0x88   :  { %208 = vrot.lane.b32.xlu0 %v808_v18, %s643_s6  ;;  %214 = vrot.lane.b32.xlu1 %v812_v19, %s643_s6  ;;  %v832_v24 = vsel %vm200_vm0, 0.0, %v169_v22  ;;  %v836_v25 = vsel %vm200_vm0, 0.0, %v170_v23  ;;  %v190_v56 = vmul.f32 %v184_v52, %v177_v51  ;;  %vm314_vm2 = vcmp.eq.s32.totalorder %v199_v53, 47  ;;  %v180_v63 = vld [vmem:[#allocation10 + $0x38] sm:$0xff]  ;;  %v174_v4 = vld [vmem:[#allocation7 + $0x40] sm:$0xff]  ;;  %v181_v5 = vld [vmem:[#allocation10 + $0x40] sm:$0xff] }
  0x89   :  { %v185_v57 = vmul.f32 %v179_v55, %v172_v54  ;;  %v350_v59 = vsub.s32 7, %v873_v50  ;;  %vm327_vm3 = vcmp.lt.s32.totalorder %v873_v50, 1  ;;  %v186_v2 = vmul.f32 %v180_v63, %v173_v62  ;;  %v175_v11 = vld [vmem:[#allocation7 + $0x48] sm:$0xff]  ;;  %v182_v12 = vld [vmem:[#allocation10 + $0x48] sm:$0xff]  ;;  %v141_v17 = vld [vmem:[#allocation6] sm:$0xff]  ;;  %s600_s21 = scalar_lea.vmem %s416_s20, 768 }
  0x8a   :  { %v876_v58 = vsel %vm314_vm2, 0.0, %v190_v56  ;;  %vm342_vm4 = vcmp.eq.s32.totalorder %v873_v50, 0  ;;  %v187_v9 = vmul.f32 %v181_v5, %v174_v4  ;;  %vm244_vm6 = vcmp.eq.s32.totalorder %v803_v8, 0  ;;  %v143_v55 = vld [vmem:[#allocation6 + $0x10] sm:$0xff]  ;;  %v146_v50 = vld [vmem:[#allocation6 + $0x28] sm:$0xff]  ;;  %p601_p3 = scmp.ne.s32.totalorder %s416_s20, %s600_s21  ;;  %p606_p5 = scmp.lt.s32.totalorder %s600_s21, %s600_s21 }
  0x8b   :  { %v321_v60 = vrot.slane %v185_v57, 7  ;;  %v326_v61 = vrot.slane %v876_v58, 7  ;;  %v351_v1 = vrot.slane %v645_v0, %v350_v59  ;;  %v322_v7 = vrot.slane %v186_v2, 7 }
  0x8c   :  { %211 = vrot.lane.b32.xlu0 %v820_v20, %s643_s6  ;;  %217 = vrot.lane.b32.xlu1 %v824_v21, %s643_s6  ;;  %v888_v16 = vstv %s138_s27  ;;  %p607_p6 = por %p606_p5, %p605_p4 }
  0x8d   :  { %v333_v3 = vsel %vm327_vm3, %v326_v61, %v321_v60  ;;  %v332_v23 = vsel %vm327_vm3, %v321_v60, %v322_v7 }
  0x8e   :  { %v352_v6 = vsel %vm342_vm4, %v351_v1, %v333_v3  ;;  %v367_v3 = vmul.f32 %v888_v16, %v143_v55  ;;  %p608_p7 = pnand %p607_p6, %p601_p3 }
  0x8f   :  { %v358_v14 = vsub.f32 %v185_v57, %v352_v6 }
  0x90   :  { %220 = vrot.lane.b32.xlu0 %v832_v24, %s643_s6  ;;  %223 = vrot.lane.b32.xlu1 %v836_v25, %s643_s6 }
  0xfa   :  { %v209_v26 = vpop.permute.xlu0 %208  ;;  %v215_v27 = vpop.permute.xlu1 %214 }
  0xfb   :  { %v210_v28 = vsel %vm207_vm1, %v209_v26, %v808_v18  ;;  %v216_v29 = vsel %vm207_vm1, %v215_v27, %v812_v19  ;;  %v323_v26 = vrot.slane %v187_v9, 7  ;;  %v188_v27 = vmul.f32 %v182_v12, %v175_v11 }
  0xfc   :  { %226 = vrot.lane.b32.xlu0 %v210_v28, %s643_s6 }
  0xfe   :  { %v212_v30 = vpop.permute.xlu0 %211  ;;  %v218_v31 = vpop.permute.xlu1 %217 }
  0xff   :  { %v213_v32 = vsel %vm207_vm1, %v212_v30, %v820_v20  ;;  %v219_v33 = vsel %vm207_vm1, %v218_v31, %v824_v21  ;;  %v176_v30 = vld [vmem:[#allocation7 + $0x50] sm:$0xff]  ;;  %v183_v31 = vld [vmem:[#allocation10 + $0x50] sm:$0xff] }
 0x100   :  { %228 = vrot.lane.b32.xlu1 %v213_v32, %s643_s6  ;;  %230 = vrot.lane.b32.xlu0 %v216_v29, %s643_s6  ;;  %v147_v32 = vld [vmem:[#allocation9] sm:$0xff] }
 0x102   :  { %v221_v34 = vpop.permute.xlu0 %220  ;;  %v224_v35 = vpop.permute.xlu1 %223 }
 0x103   :  { %v222_v36 = vsel %vm207_vm1, %v221_v34, %v832_v24  ;;  %v225_v37 = vsel %vm207_vm1, %v224_v35, %v836_v25  ;;  %v897_v34 = vstv %s438_s18 }
 0x104   :  { %232 = vrot.lane.b32.xlu1 %v219_v33, %s643_s6  ;;  %234 = vrot.lane.b32.xlu0 %v222_v36, %s643_s6  ;;  %v895_v33 = vstv %s437_s16  ;;  %v365_v36 = vmul.f32 %v888_v16, %v141_v17 }
 0x108   :  { %236 = vrot.lane.b32.xlu1 %v225_v37, %s643_s6 }
 0x16e   :  { %v227_v38 = vpop.permute.xlu0 %226 }
 0x16f   :  { %259 = vrot.lane.b32.xlu1 %v227_v38, %s644_s4  ;;  %v238_v39 = vsel %vm207_vm1, %v227_v38, %v808_v18  ;;  %v359_v38 = vsub.f32 %v186_v2, %v332_v23  ;;  %v149_v2 = vld [vmem:[#allocation9 + $0x10] sm:$0xff] }
 0x170   :  { %257 = vrot.lane.b32.xlu0 %v238_v39, %s644_s4  ;;  %v142_v39 = vld [vmem:[#allocation6 + $0x8] sm:$0xff] }
 0x172   :  { %v229_v40 = vpop.permute.xlu1 %228  ;;  %v231_v41 = vpop.permute.xlu0 %230 }
 0x173   :  { %263 = vrot.lane.b32.xlu1 %v229_v40, %s644_s4  ;;  %v239_v42 = vsel %vm207_vm1, %v229_v40, %v820_v20  ;;  %v240_v43 = vsel %vm207_vm1, %v231_v41, %v812_v19 }
 0x174   :  { %261 = vrot.lane.b32.xlu0 %v239_v42, %s644_s4  ;;  %v324_v42 = vrot.slane %v188_v27, 7 }
 0x176   :  { %v233_v44 = vpop.permute.xlu1 %232  ;;  %v235_v46 = vpop.permute.xlu0 %234  ;;  %v330_v59 = vsel %vm327_vm3, %v323_v26, %v324_v42 }
 0x177   :  { %267 = vrot.lane.b32.xlu1 %v231_v41, %s644_s4  ;;  %v241_v45 = vsel %vm207_vm1, %v233_v44, %v824_v21  ;;  %v242_v47 = vsel %vm207_vm1, %v235_v46, %v832_v24 }
 0x178   :  { %265 = vrot.lane.b32.xlu0 %v240_v43, %s644_s4  ;;  %v189_v43 = vmul.f32 %v183_v31, %v176_v30  ;;  %v145_v30 = vld [vmem:[#allocation6 + $0x20] sm:$0xff] }
 0x17a   :  { %v237_v48 = vpop.permute.xlu1 %236  ;;  %v325_v60 = vrot.slane %v189_v43, 7 }
 0x17b   :  { %271 = vrot.lane.b32.xlu1 %v233_v44, %s644_s4  ;;  %v243_v49 = vsel %vm207_vm1, %v237_v48, %v836_v25 }
 0x17c   :  { %269 = vrot.lane.b32.xlu0 %v241_v45, %s644_s4  ;;  %v391_v45 = vmul.f32 %v897_v34, %v147_v32  ;;  %v329_v12 = vsel %vm327_vm3, %v324_v42, %v325_v60 }
 0x17f   :  { %275 = vrot.lane.b32.xlu1 %v235_v46, %s644_s4 }
 0x180   :  { %273 = vrot.lane.b32.xlu0 %v242_v47, %s644_s4 }
 0x183   :  { %279 = vrot.lane.b32.xlu1 %v237_v48, %s644_s4  ;;  %v148_v48 = vld [vmem:[#allocation9 + $0x8] sm:$0xff] }
 0x184   :  { %277 = vrot.lane.b32.xlu0 %v243_v49, %s644_s4  ;;  %v366_v49 = vmul.f32 %v888_v16, %v142_v39  ;;  %v392_v63 = vmul.f32 %v897_v34, %v148_v48 }
 0x1e1   :  { %v260_v10 = vpop.permute.xlu1 %259 }
 0x1e2   :  { %v258_v13 = vpop.permute.xlu0 %257 }
 0x1e3   :  { %v282_v15 = vsel %vm281_vm5, %v258_v13, %v260_v10 }
 0x1e4   :  { %v294_v22 = vsel %vm244_vm6, 0.0, %v282_v15 }
 0x1e5   :  { %v300_v28 = vsub.f32 %v808_v18, %v294_v22  ;;  %v264_v29 = vpop.permute.xlu1 %263  ;;  %v331_v18 = vsel %vm327_vm3, %v322_v7, %v323_v26  ;;  %v361_v7 = vsub.f32 %v188_v27, %v330_v59  ;;  %v150_v22 = vld [vmem:[#allocation9 + $0x18] sm:$0xff] }
 0x1e6   :  { %v262_v35 = vpop.permute.xlu0 %261  ;;  %v360_v54 = vsub.f32 %v187_v9, %v331_v18  ;;  %v144_v9 = vld [vmem:[#allocation6 + $0x18] sm:$0xff] }
 0x1e7   :  { %v371_v37 = vadd.f32 %v358_v14, %v300_v28  ;;  %v283_v40 = vsel %vm281_vm5, %v262_v35, %v264_v29  ;;  %v393_v14 = vmul.f32 %v897_v34, %v149_v2  ;;  %v368_v23 = vmul.f32 %v888_v16, %v144_v9 }
 0x1e8   :  { %v295_v41 = vsel %vm244_vm6, 0.0, %v283_v40  ;;  %v362_v29 = vsub.f32 %v189_v43, %v329_v12  ;;  %v151_v40 = vld [vmem:[#allocation9 + $0x20] sm:$0xff] }
 0x1e9   :  { %v378_v44 = vmul.f32 %v895_v33, %v371_v37  ;;  %v301_v46 = vsub.f32 %v820_v20, %v295_v41  ;;  %v268_v47 = vpop.permute.xlu1 %267  ;;  %v394_v37 = vmul.f32 %v897_v34, %v150_v22  ;;  %v369_v41 = vmul.f32 %v888_v16, %v145_v30 }
 0x1ea   :  { %v266_v51 = vpop.permute.xlu0 %265 }
 0x1eb   :  { %v384_v52 = vadd.f32 %v378_v44, %v365_v36  ;;  %v372_v53 = vadd.f32 %v359_v38, %v301_v46  ;;  %v284_v56 = vsel %vm281_vm5, %v266_v51, %v268_v47  ;;  %v395_v47 = vmul.f32 %v897_v34, %v151_v40 }
 0x1ec   :  { %v296_v57 = vsel %vm244_vm6, 0.0, %v284_v56 }
 0x1ed   :  { %v397_v20 = vadd.f32 %v391_v45, %v384_v52  ;;  %v379_v62 = vmul.f32 %v895_v33, %v372_v53  ;;  %v302_v0 = vsub.f32 %v812_v19, %v296_v57  ;;  %v272_v1 = vpop.permute.xlu1 %271  ;;  %v370_v52 = vmul.f32 %v888_v16, %v146_v50 }
 0x1ee   :  { %v270_v4 = vpop.permute.xlu0 %269 }
 0x1ef   :  { %v385_v5 = vadd.f32 %v379_v62, %v366_v49  ;;  %v373_v6 = vadd.f32 %v360_v54, %v302_v0  ;;  %v285_v10 = vsel %vm281_vm5, %v270_v4, %v272_v1  ;;  %404 = vst.msk [vmem:[#allocation15] sm:$0xff] %vm403_vm7, %v397_v20  ;;  %v152_v49 = vld [vmem:[#allocation9 + $0x28] sm:$0xff] }
 0x1f0   :  { %v297_v11 = vsel %vm244_vm6, 0.0, %v285_v10  ;;  %v396_v8 = vmul.f32 %v897_v34, %v152_v49 }
 0x1f1   :  { %v398_v19 = vadd.f32 %v392_v63, %v385_v5  ;;  %v380_v13 = vmul.f32 %v895_v33, %v373_v6  ;;  %v303_v15 = vsub.f32 %v824_v21, %v297_v11  ;;  %v276_v17 = vpop.permute.xlu1 %275  ;;  %v328_v21 = vsel %vm327_vm3, %v325_v60, %v326_v61 }
 0x1f2   :  { %v274_v26 = vpop.permute.xlu0 %273  ;;  %v363_v44 = vsub.f32 %v876_v58, %v328_v21 }
 0x1f3   :  { %v386_v27 = vadd.f32 %v380_v13, %v367_v3  ;;  %v374_v28 = vadd.f32 %v361_v7, %v303_v15  ;;  %v286_v31 = vsel %vm281_vm5, %v274_v26, %v276_v17  ;;  %405 = vst.msk [vmem:[#allocation15 + $0x8] sm:$0xff] %vm403_vm7, %v398_v19 }
 0x1f4   :  { %v298_v32 = vsel %vm244_vm6, 0.0, %v286_v31 }
 0x1f5   :  { %v399_v35 = vadd.f32 %v393_v14, %v386_v27  ;;  %v381_v36 = vmul.f32 %v895_v33, %v374_v28  ;;  %v304_v38 = vsub.f32 %v832_v24, %v298_v32  ;;  %v280_v39 = vpop.permute.xlu1 %279 }
 0x1f6   :  { %v278_v18 = vpop.permute.xlu0 %277 }
 0x1f7   :  { %v387_v42 = vadd.f32 %v381_v36, %v368_v23  ;;  %v375_v43 = vadd.f32 %v362_v29, %v304_v38  ;;  %v287_v45 = vsel %vm281_vm5, %v278_v18, %v280_v39  ;;  %406 = vst.msk [vmem:[#allocation15 + $0x10] sm:$0xff] %vm403_vm7, %v399_v35 }
 0x1f8   :  { %v299_v61 = vsel %vm244_vm6, 0.0, %v287_v45 }
 0x1f9   :  { %v400_v46 = vadd.f32 %v394_v37, %v387_v42  ;;  %v382_v24 = vmul.f32 %v895_v33, %v375_v43  ;;  %v305_v48 = vsub.f32 %v836_v25, %v299_v61 }
 0x1fb   :  { %v388_v51 = vadd.f32 %v382_v24, %v369_v41  ;;  %v376_v58 = vadd.f32 %v363_v44, %v305_v48  ;;  %407 = vst.msk [vmem:[#allocation15 + $0x18] sm:$0xff] %vm403_vm7, %v400_v46 }
 0x1fd   :  { %v401_v53 = vadd.f32 %v395_v47, %v388_v51  ;;  %v383_v54 = vmul.f32 %v895_v33, %v376_v58 }
 0x1ff   :  { %v389_v55 = vadd.f32 %v383_v54, %v370_v52  ;;  %408 = vst.msk [vmem:[#allocation15 + $0x20] sm:$0xff] %vm403_vm7, %v401_v53 }
 0x201   :  { %v402_v56 = vadd.f32 %v396_v8, %v389_v55 }
 0x203   :  { %409 = vst.msk [vmem:[#allocation15 + $0x28] sm:$0xff] %vm403_vm7, %v402_v56 }
 0x204   :  { %611 = shalt.err (!%p608_p7)
}
 0x205   :  { %s612_s24 = scalar_lea.hbm %s976_s7, 768 }
 0x206   :  { %p613_p8 = scmp.ne.s32.totalorder %s976_s7, %s612_s24  ;;  %p616_p9 = scmp.lt.u32.totalorder %s612_s24, %s976_s7 }
 0x208   :  { %p618_p10 = pnand %p616_p9, %p613_p8 }
 0x20a   :  { %621 = shalt.err (!%p618_p10)
}
 0x20b   :  { %421 = dma.vmem_to_hbm [thread:$0]  %s416_s20, 768, %s976_s7, [#allocation4], %s636_s13, %s636_s13, %s637_s14  }
 0x20c   :  { %632 = dma.done.wait [#allocation4], 768  }
 0x20d   :  { %633 = vsyncadd [#allocation4], 4294966528 }
 0x20e   :  { %425 = vsyncpa [#allocation3], 1 }
 0x20f   :  { %426 = vsyncpa [#allocation8], 1 }
 0x210   :  { %427 = vsyncpa [#allocation11], 1 }
 0x211   :  { %428 = vsyncpa [#allocation14], 1 }
 0x212   :  { %429 = vsyncpa [#allocation4], 1 }
 0x213   :  { %430 = vsyncpa [#allocation5], 1 }

</bundles_post_ra>
